<compile_context>
chip_gen: v5e
topology: v5e:2x2
jax: 0.10.0
libtpu: 0.0.40
codegen_flags: <defaults>
</compile_context>

<pallas_src>
import math
import jax
import jax.numpy as jnp
from jax.experimental import pallas as pl
from jax.experimental.pallas import tpu as pltpu


# ----------------------------- small helpers -----------------------------

def _cdiv(a, b):
    return -(-a // b)


def _round_up(x, m):
    return _cdiv(x, m) * m


def _gelu_tanh(x):
    # tanh-approx GELU (GPT-Neo's gelu_new): exp/tanh hits the EUP slot, which is idle
    # while the MXU runs; the exact-erf form lowers to a long f32 VALU polynomial.
    c = math.sqrt(2.0 / math.pi)
    return 0.5 * x * (1.0 + jnp.tanh(c * (x + 0.044715 * (x * x * x))))


def _pad_to(a, shape):
    """Zero-pad `a` up to `shape`; no-op (no HBM copy) when already that shape."""
    if tuple(a.shape) == tuple(shape):
        return a
    return jnp.pad(a, [(0, t - s) for s, t in zip(a.shape, shape)])


def _chip_config():
    """Best-effort per-generation defaults with safe fallbacks."""
    vmem_cap = 64 << 20          # conservative fallback: v7x per-TensorCore VMEM
    tm_target = 512              # good weight-reuse target for v6e/v7x rooflines
    two_tc = False
    try:
        vmem_cap = int(pltpu.get_tpu_info().vmem_capacity_bytes)
    except Exception:
        pass
    try:
        kind = jax.devices()[0].device_kind.lower()
        if ("v5" in kind) or ("v3" in kind) or ("v2" in kind):
            tm_target = 256      # v5e crossover ~240 flop/byte: 256 is already enough
        if "v7" in kind:
            two_tc = True        # two TensorCores share the parallel M axis
    except Exception:
        pass
    return vmem_cap, tm_target, two_tc


# ----------------------------- parameter prep -----------------------------

def prepare_mlp_params(w1, b1, w2, b2):
    """Pad feature dims to x128 and cast matmul operands to bf16 ONCE (at init time).

    Doing this per forward call would re-stream every weight through HBM (read+write),
    roughly doubling traffic for a weight-bandwidth-bound MLP.
    w1: [n_embd, hidden], b1: [hidden], w2: [hidden, out], b2: [out].
    """
    n_embd, hidden = w1.shape
    out_dim = w2.shape[1]
    Kp = _round_up(n_embd, 128)
    Hp = _round_up(hidden, 128)
    Np = _round_up(out_dim, 128)
    return dict(
        w1=_pad_to(w1.astype(jnp.bfloat16), (Kp, Hp)),
        b1=_pad_to(b1.astype(jnp.float32).reshape(1, -1), (1, Hp)),
        w2=_pad_to(w2.astype(jnp.bfloat16), (Hp, Np)),
        b2=_pad_to(b2.astype(jnp.float32).reshape(1, -1), (1, Np)),
        n_embd=n_embd, hidden=hidden, out_dim=out_dim,
    )


# ----------------------------- kernel -----------------------------

def mlp_kernel(x_ref, w1_ref, b1_ref, w2_ref, b2_ref, o_ref, acc_ref):
    k = pl.program_id(1)

    @pl.when(k == 0)
    def _():
        acc_ref[...] = jnp.zeros_like(acc_ref)

    # fc1 chunk: [tm, Kp](bf16) @ [Kp, tk](bf16) -> f32; bias + GELU in f32.
    h = jnp.dot(x_ref[...], w1_ref[...], preferred_element_type=jnp.float32)
    h = _gelu_tanh(h + b1_ref[...])

    # fc2 partial: [tm, tk](bf16) @ [tk, Np](bf16) -> accumulate f32.
    acc_ref[...] += jnp.dot(h.astype(w2_ref.dtype), w2_ref[...],
                            preferred_element_type=jnp.float32)

    @pl.when(k == pl.num_programs(1) - 1)
    def _():
        o_ref[...] = (acc_ref[...] + b2_ref[...]).astype(o_ref.dtype)


# ----------------------------- wrapper -----------------------------

def mlp_pallas(x, params):
    """x: [M, n_embd] -> [M, out_dim] (x.dtype). `params` from prepare_mlp_params."""
    M, n_embd = x.shape
    assert n_embd == params["n_embd"]
    w1p, b1p, w2p, b2p = params["w1"], params["b1"], params["w2"], params["b2"]
    out_dim = params["out_dim"]
    Kp, H128 = w1p.shape
    Np = w2p.shape[1]
    out_dtype = x.dtype
    out_isize = jnp.dtype(out_dtype).itemsize

    vmem_cap, tm_target, two_tc = _chip_config()
    vmem_budget = int(0.80 * vmem_cap)      # tile budget; limit gets a bit more below

    # ---- M tiling: balanced tiles; >=2 blocks on dual-TC chips so no core idles ----
    n_m = max(1, _cdiv(M, tm_target))
    if two_tc and n_m == 1 and M >= 256:
        n_m = 2
    tm = _round_up(_cdiv(M, n_m), 8)

    # ---- tk from the VMEM budget: 2x-buffered W1/W2 bf16 tiles ~ 4*tk*(Kp+Np) B ----
    fixed = 0
    tk_max = 128
    for _ in range(16):
        fixed = (2 * tm * Kp * 2               # x tile, double-buffered bf16
                 + tm * Np * 4                 # f32 accumulator scratch
                 + 2 * tm * Np * out_isize     # out tile, double-buffered
                 + 2 * Np * 4)                 # b2, double-buffered f32
        tk_max = (vmem_budget - fixed) // (4 * (Kp + Np) + 8)
        if tk_max >= 128 or tm <= 8:
            break
        # Huge feature dims: trade token-tile height for hidden-tile width.
        tm = max(8, _round_up(tm // 2, 8))
        n_m = _cdiv(M, tm)
        tm = _round_up(_cdiv(M, n_m), 8)
    tk_max = max(128, tk_max)

    # tk must divide the (x128-padded) hidden dim so the once-padded weights stay
    # tile-agnostic (no per-call repadding of W1/W2).
    h_units = H128 // 128
    tk_units = 1
    for cand in range(min(h_units, tk_max // 128), 0, -1):
        if h_units % cand == 0:
            tk_units = cand
            break
    tk = tk_units * 128
    n_k = H128 // tk
    Mp = n_m * tm

    # ---- x: cast/pad only when actually needed (weights were prepared at init) ----
    xb = _pad_to(x.astype(jnp.bfloat16), (Mp, Kp))

    # ---- VMEM limit: actual need (+slack), clamped to ~85% of physical capacity ----
    need = fixed + tk * (4 * (Kp + Np) + 8) + (4 << 20)
    vmem_limit = int(min(max(need, 32 << 20), int(0.85 * vmem_cap)))

    cost = pl.CostEstimate(
        flops=2 * Mp * Kp * H128 + 2 * Mp * H128 * Np,
        transcendentals=Mp * H128,
        bytes_accessed=(xb.size * 2 + Mp * Np * out_isize
                        + n_m * (w1p.size * 2 + w2p.size * 2 + (H128 + Np) * 4)),
    )

    out_p = pl.pallas_call(
        mlp_kernel,
        out_shape=jax.ShapeDtypeStruct((Mp, Np), out_dtype),
        grid_spec=pltpu.PrefetchScalarGridSpec(
            num_scalar_prefetch=0,
            grid=(n_m, n_k),
            in_specs=[
                pl.BlockSpec((tm, Kp), lambda i, k: (i, 0)),     # x tile (k-invariant)
                pl.BlockSpec((Kp, tk), lambda i, k: (0, k)),     # W1 column block
                pl.BlockSpec((1, tk), lambda i, k: (0, k)),      # b1 chunk
                pl.BlockSpec((tk, Np), lambda i, k: (k, 0)),     # W2 row block
                pl.BlockSpec((1, Np), lambda i, k: (0, 0)),      # b2 (full)
            ],
            out_specs=pl.BlockSpec((tm, Np), lambda i, k: (i, 0)),
            scratch_shapes=[pltpu.VMEM((tm, Np), jnp.float32)],
        ),
        compiler_params=pltpu.CompilerParams(
            dimension_semantics=("parallel", "arbitrary"),
            vmem_limit_bytes=vmem_limit,
        ),
        cost_estimate=cost,
    )(xb, w1p, b1p, w2p, b2p)

    return out_p[:M, :out_dim]


# ----------------------------- reference & test -----------------------------

def mlp_reference(x, w1, b1, w2, b2):
    # Matches kernel numerics: bf16 matmul operands, f32 accumulation, tanh-approx GELU.
    h = jnp.dot(x.astype(jnp.bfloat16), w1.astype(jnp.bfloat16),
                preferred_element_type=jnp.float32) + b1.astype(jnp.float32)
    h = _gelu_tanh(h)
    return jnp.dot(h.astype(jnp.bfloat16), w2.astype(jnp.bfloat16),
                   preferred_element_type=jnp.float32) + b2.astype(jnp.float32)


if __name__ == "__main__":
    # Small shapes consistent with the module's forward (n_embd -> hidden -> output).
    batch, seq = 2, 8
    n_embd, hidden_dim, output_dim = 32, 64, 32

    key = jax.random.PRNGKey(0)
    k_x, k_w1, k_b1, k_w2, k_b2 = jax.random.split(key, 5)

    x = jax.random.normal(k_x, (batch, seq, n_embd), dtype=jnp.float32)

    # Deterministic nn.Linear-like init, stored [in, out] (transposed vs torch [out, in]).
    lim1 = 1.0 / math.sqrt(n_embd)
    lim2 = 1.0 / math.sqrt(hidden_dim)
    w1 = jax.random.uniform(k_w1, (n_embd, hidden_dim), minval=-lim1, maxval=lim1)
    b1 = jax.random.uniform(k_b1, (hidden_dim,), minval=-lim1, maxval=lim1)
    w2 = jax.random.uniform(k_w2, (hidden_dim, output_dim), minval=-lim2, maxval=lim2)
    b2 = jax.random.uniform(k_b2, (output_dim,), minval=-lim2, maxval=lim2)

    # One-time parameter prep (pad to x128 + bf16 cast) -- not per forward call.
    params = prepare_mlp_params(w1, b1, w2, b2)

    # Flatten (batch, seq) -> tokens for the kernel; restore after.
    x2d = x.reshape(batch * seq, n_embd)
    out2d = mlp_pallas(x2d, params)
    out = out2d.reshape(batch, seq, output_dim)
    jax.block_until_ready(out)

    # Sanity check vs. pure-JAX reference with matching (bf16 operand, tanh-GELU) numerics.
    # TODO(synk): nn.GELU() default is exact erf; tanh-approx (GPT-Neo gelu_new) used per perf guidance.
    ref = mlp_reference(x2d, w1, b1, w2, b2).reshape(batch, seq, output_dim)
    assert jnp.allclose(out, ref, atol=5e-3, rtol=5e-3), "mismatch vs reference"

    print("KERNEL_OK")
</pallas_src>

<mosaic_0001>
module attributes {stable_mosaic.version = 11 : i64} {
  func.func @mlp_kernel(%arg0: i32, %arg1: i32, %arg2: memref<16x128xbf16, #tpu.memory_space<vmem>>, %arg3: memref<128x128xbf16, #tpu.memory_space<vmem>>, %arg4: memref<1x128xf32, #tpu.memory_space<vmem>>, %arg5: memref<128x128xbf16, #tpu.memory_space<vmem>>, %arg6: memref<1x128xf32, #tpu.memory_space<vmem>>, %arg7: memref<16x128xf32, #tpu.memory_space<vmem>>, %arg8: memref<16x128xf32, #tpu.memory_space<vmem>>) attributes {dimension_semantics = [#tpu.dimension_semantics<parallel>, #tpu.dimension_semantics<arbitrary>], iteration_bounds = array<i64: 1, 1>, scalar_prefetch = 0 : i64, scratch_operands = 1 : i64, tpu.core_type = #tpu.core_type<tc>, window_params = [{transform_indices = @transform_0, window_bounds = array<i64: 16, 128>}, {transform_indices = @transform_1, window_bounds = array<i64: 128, 128>}, {transform_indices = @transform_2, window_bounds = array<i64: 1, 128>}, {transform_indices = @transform_3, window_bounds = array<i64: 128, 128>}, {pipeline_mode = #tpu.pipeline_mode<synchronous>, transform_indices = @transform_4, window_bounds = array<i64: 1, 128>}, {transform_indices = @transform_5, window_bounds = array<i64: 16, 128>}]} {
    %c0_i32 = arith.constant 0 : i32
    %0 = arith.cmpi eq, %arg1, %c0_i32 : i32
    %1 = arith.extui %0 : i1 to i32
    %c0_i32_0 = arith.constant 0 : i32
    %2 = arith.cmpi ne, %1, %c0_i32_0 : i32
    scf.if %2 {
      %cst_19 = arith.constant 0.000000e+00 : f32
      %31 = vector.broadcast %cst_19 : f32 to vector<16x128xf32>
      %c0_20 = arith.constant 0 : index
      %c0_21 = arith.constant 0 : index
      %32 = vector.load %arg8[%c0_20, %c0_21] : memref<16x128xf32, #tpu.memory_space<vmem>>, vector<16x128xf32>
      tpu.vector_store %arg8[%c0_20, %c0_21], %31 {strides = array<i32>} : memref<16x128xf32, #tpu.memory_space<vmem>>, vector<16x128xf32>,
    } else {
    }
    %c0 = arith.constant 0 : index
    %c0_1 = arith.constant 0 : index
    %3 = vector.load %arg2[%c0, %c0_1] : memref<16x128xbf16, #tpu.memory_space<vmem>>, vector<16x128xbf16>
    %c0_2 = arith.constant 0 : index
    %c0_3 = arith.constant 0 : index
    %4 = vector.load %arg3[%c0_2, %c0_3] : memref<128x128xbf16, #tpu.memory_space<vmem>>, vector<128x128xbf16>
    %cst = arith.constant dense<0.000000e+00> : vector<16x128xf32>
    %5 = tpu.matmul %3, %4, %cst {dimension_numbers = #tpu.dot_dimension_numbers<[1], [0], [0], [1], [0, 0, 1, 1], [], []>} : vector<16x128xbf16>, vector<128x128xbf16>, vector<16x128xf32> -> vector<16x128xf32>
    %c0_4 = arith.constant 0 : index
    %c0_5 = arith.constant 0 : index
    %6 = vector.load %arg4[%c0_4, %c0_5] : memref<1x128xf32, #tpu.memory_space<vmem>>, vector<1x128xf32>
    %7 = vector.broadcast %6 : vector<1x128xf32> to vector<16x128xf32>
    %8 = arith.addf %5, %7 : vector<16x128xf32>
    %cst_6 = arith.constant 5.000000e-01 : f32
    %9 = vector.broadcast %cst_6 : f32 to vector<16x128xf32>
    %10 = arith.mulf %9, %8 : vector<16x128xf32>
    %11 = arith.mulf %8, %8 : vector<16x128xf32>
    %12 = arith.mulf %11, %8 : vector<16x128xf32>
    %cst_7 = arith.constant 4.471500e-02 : f32
    %13 = vector.broadcast %cst_7 : f32 to vector<16x128xf32>
    %14 = arith.mulf %13, %12 : vector<16x128xf32>
    %15 = arith.addf %8, %14 : vector<16x128xf32>
    %cst_8 = arith.constant 0.797884583 : f32
    %16 = vector.broadcast %cst_8 : f32 to vector<16x128xf32>
    %17 = arith.mulf %16, %15 : vector<16x128xf32>
    %18 = math.tanh %17 : vector<16x128xf32>
    %cst_9 = arith.constant 1.000000e+00 : f32
    %19 = vector.broadcast %cst_9 : f32 to vector<16x128xf32>
    %20 = arith.addf %19, %18 : vector<16x128xf32>
    %21 = arith.mulf %10, %20 : vector<16x128xf32>
    %c0_10 = arith.constant 0 : index
    %c0_11 = arith.constant 0 : index
    %22 = vector.load %arg8[%c0_10, %c0_11] : memref<16x128xf32, #tpu.memory_space<vmem>>, vector<16x128xf32>
    %23 = arith.truncf %21 : vector<16x128xf32> to vector<16x128xbf16>
    %c0_12 = arith.constant 0 : index
    %c0_13 = arith.constant 0 : index
    %24 = vector.load %arg5[%c0_12, %c0_13] : memref<128x128xbf16, #tpu.memory_space<vmem>>, vector<128x128xbf16>
    %cst_14 = arith.constant dense<0.000000e+00> : vector<16x128xf32>
    %25 = tpu.matmul %23, %24, %cst_14 {dimension_numbers = #tpu.dot_dimension_numbers<[1], [0], [0], [1], [0, 0, 1, 1], [], []>} : vector<16x128xbf16>, vector<128x128xbf16>, vector<16x128xf32> -> vector<16x128xf32>
    %26 = arith.addf %22, %25 : vector<16x128xf32>
    %c0_15 = arith.constant 0 : index
    %c0_16 = arith.constant 0 : index
    %27 = vector.load %arg8[%c0_15, %c0_16] : memref<16x128xf32, #tpu.memory_space<vmem>>, vector<16x128xf32>
    tpu.vector_store %arg8[%c0_15, %c0_16], %26 {strides = array<i32>} : memref<16x128xf32, #tpu.memory_space<vmem>>, vector<16x128xf32>,
    %c0_i32_17 = arith.constant 0 : i32
    %28 = arith.cmpi eq, %arg1, %c0_i32_17 : i32
    %29 = arith.extui %28 : i1 to i32
    %c0_i32_18 = arith.constant 0 : i32
    %30 = arith.cmpi ne, %29, %c0_i32_18 : i32
    scf.if %30 {
      %c0_19 = arith.constant 0 : index
      %c0_20 = arith.constant 0 : index
      %31 = vector.load %arg8[%c0_19, %c0_20] : memref<16x128xf32, #tpu.memory_space<vmem>>, vector<16x128xf32>
      %c0_21 = arith.constant 0 : index
      %c0_22 = arith.constant 0 : index
      %32 = vector.load %arg6[%c0_21, %c0_22] : memref<1x128xf32, #tpu.memory_space<vmem>>, vector<1x128xf32>
      %33 = vector.broadcast %32 : vector<1x128xf32> to vector<16x128xf32>
      %34 = arith.addf %31, %33 : vector<16x128xf32>
      %c0_23 = arith.constant 0 : index
      %c0_24 = arith.constant 0 : index
      %35 = vector.load %arg7[%c0_23, %c0_24] : memref<16x128xf32, #tpu.memory_space<vmem>>, vector<16x128xf32>
      tpu.vector_store %arg7[%c0_23, %c0_24], %34 {strides = array<i32>} : memref<16x128xf32, #tpu.memory_space<vmem>>, vector<16x128xf32>,
    } else {
    }
    return
  }
  func.func @transform_0(%arg0: i32, %arg1: i32) -> (i32, i32) {
    %c0_i32 = arith.constant 0 : i32
    %c0_i32_0 = arith.constant 0 : i32
    return %arg0, %c0_i32 : i32, i32
  }
  func.func @transform_1(%arg0: i32, %arg1: i32) -> (i32, i32) {
    %c0_i32 = arith.constant 0 : i32
    %c0_i32_0 = arith.constant 0 : i32
    return %c0_i32, %arg1 : i32, i32
  }
  func.func @transform_2(%arg0: i32, %arg1: i32) -> (i32, i32) {
    %c0_i32 = arith.constant 0 : i32
    %c0_i32_0 = arith.constant 0 : i32
    return %c0_i32, %arg1 : i32, i32
  }
  func.func @transform_3(%arg0: i32, %arg1: i32) -> (i32, i32) {
    %c0_i32 = arith.constant 0 : i32
    %c0_i32_0 = arith.constant 0 : i32
    return %arg1, %c0_i32 : i32, i32
  }
  func.func @transform_4(%arg0: i32, %arg1: i32) -> (i32, i32) {
    %c0_i32 = arith.constant 0 : i32
    %c0_i32_0 = arith.constant 0 : i32
    %c0_i32_1 = arith.constant 0 : i32
    return %c0_i32, %c0_i32_0 : i32, i32
  }
  func.func @transform_5(%arg0: i32, %arg1: i32) -> (i32, i32) {
    %c0_i32 = arith.constant 0 : i32
    %c0_i32_0 = arith.constant 0 : i32
    return %arg0, %c0_i32 : i32, i32
  }
}

</mosaic_0001>

<bundles_post_ra>
// kernel: tpu_custom_call.1
= control target key start
LH: loop header
LB: loop body
LE: loop exit
PB: predicated region body
PF: predicated region fallthrough
CT: control target
= control target key end

     0   :  { %10 = vsyncpa [#allocation4], 0  ;;  %s557_s0 = inlined_call_operand.hbm [shape: bf16[16,128], index: 0, kind: input, shape index: {}]   ;;  %s558_s1 = inlined_call_operand.hbm [shape: bf16[128,128], index: 1, kind: input, shape index: {}]   ;;  %s559_s2 = inlined_call_operand.vmem [shape: f32[1,128], index: 2, kind: input, shape index: {}]   ;;  %s560_s3 = inlined_call_operand.hbm [shape: bf16[128,128], index: 3, kind: input, shape index: {}]   ;;  %s561_s4 = inlined_call_operand.vmem [shape: f32[1,128], index: 4, kind: input, shape index: {}]   ;;  %s562_s5 = inlined_call_operand.hbm [shape: f32[16,128], index: 5, kind: output, shape index: {}]  }
   0x1   :  { %11 = vsyncpa [#allocation7], 0 }
   0x2   :  { %12 = vsyncpa [#allocation5], 0  ;;  %s30_s20 = sshll.u32 %s558_s1, 4  ;;  %s501_s21 = smov [#allocation6]   ;;  %s31_s20 = int_to_ptr.hbm [resolvable:$true] %s30_s20 }
   0x3   :  { %s32_s22 = sshll.u32 %s501_s21, 4  ;;  %s17_s25 = sshll.u32 %s557_s0, 4  ;;  %s33_s22 = int_to_ptr.vmem [resolvable:$true] %s32_s22  ;;  %s18_s25 = int_to_ptr.hbm [resolvable:$true] %s17_s25 }
   0x4   :  { %s502_s26 = smov 64   ;;  %s503_s27 = smov 4  }
   0x5   :  { %38 = dma.hbm_to_vmem [thread:$0]  %s31_s20, 1024, %s33_s22, [#allocation7], %s502_s26, %s502_s26, %s503_s27  }
   0x6   :  { %s504_s28 = smov [#allocation3]   ;;  %s45_s7 = sshll.u32 %s560_s3, 4  ;;  %s46_s7 = int_to_ptr.hbm [resolvable:$true] %s45_s7 }
   0x7   :  { %s19_s29 = sshll.u32 %s504_s28, 4  ;;  %s505_s1 = smov [#allocation8]   ;;  %s20_s29 = int_to_ptr.vmem [resolvable:$true] %s19_s29 }
   0x8   :  { %25 = dma.hbm_to_vmem [thread:$0]  %s18_s25, 128, %s20_s29, [#allocation4], %s502_s26, %s502_s26, %s503_s27  }
   0x9   :  { %s47_s8 = sshll.u32 %s505_s1, 4  ;;  %s48_s8 = int_to_ptr.vmem [resolvable:$true] %s47_s8 }
   0xa   :  { %53 = dma.hbm_to_vmem [thread:$0]  %s46_s7, 1024, %s48_s8, [#allocation7], %s502_s26, %s502_s26, %s503_s27  }
   0xb   :  { %495 = dma.done.wait [#allocation4], 128  }
   0xc   :  { %496 = vsyncadd [#allocation4], 4294967168 }
   0xd   :  { %497 = dma.done.wait [#allocation7], 2048  }
   0xe   :  { %498 = vsyncadd [#allocation7], 4294965248  ;;  %v376_v0 = vld [vmem:[#allocation6 + $0x38] sm:$0xff]  ;;  %v375_v1 = vld [vmem:[#allocation6 + $0x30] sm:$0xff]  ;;  %s506_s10 = smov [#allocation9]   ;;  %s286_s14 = sshll.u32 %s562_s5, 4  ;;  %s287_s14 = int_to_ptr.hbm [resolvable:$true] %s286_s14 }
   0xf   :  { %150 = vmatpush.bf16.msra.mxu0 %v376_v0  ;;  %v374_v2 = vld [vmem:[#allocation6 + $0x28] sm:$0xff]  ;;  %v373_v3 = vld [vmem:[#allocation6 + $0x20] sm:$0xff]  ;;  %v372_v4 = vld [vmem:[#allocation6 + $0x18] sm:$0xff]  ;;  %s284_s11 = sshll.u32 %s506_s10, 4  ;;  %s507_s15 = smov 128   ;;  %s285_s11 = int_to_ptr.vmem [resolvable:$true] %s284_s11 }
  0x10   :  { %v371_v5 = vld [vmem:[#allocation6 + $0x10] sm:$0xff]  ;;  %v370_v6 = vld [vmem:[#allocation6 + $0x8] sm:$0xff]  ;;  %v369_v7 = vld [vmem:[#allocation6] sm:$0xff]  ;;  %s508_s16 = smov 8  }
  0x11   :  { %v368_v8 = vld [vmem:[#allocation3] sm:$0xff]  ;;  %v383_v10 = vld [vmem:[#allocation8 + $0x30] sm:$0xff]  ;;  %v382_v11 = vld [vmem:[#allocation8 + $0x28] sm:$0xff] }
  0x12   :  { %v384_v9 = vld [vmem:[#allocation8 + $0x38] sm:$0xff]  ;;  %v381_v12 = vld [vmem:[#allocation8 + $0x20] sm:$0xff]  ;;  %v379_v14 = vld [vmem:[#allocation8 + $0x10] sm:$0xff] }
  0x13   :  { %151 = vmatpush.bf16.msra.mxu0 %v375_v1  ;;  %249 = vmatpush.bf16.msra.mxu1 %v384_v9  ;;  %v380_v13 = vld [vmem:[#allocation8 + $0x18] sm:$0xff]  ;;  %v378_v15 = vld [vmem:[#allocation8 + $0x8] sm:$0xff]  ;;  %v377_v16 = vld [vmem:[#allocation8] sm:$0xff] }
  0x14   :  { %v393_v17 = vld [vmem:[%s559_s2] ss:$0 sm:$0xff] }
  0x15   :  { %v394_v41 = vld [vmem:[%s561_s4] ss:$0 sm:$0xff] }
  0x17   :  { %152 = vmatpush.bf16.msra.mxu0 %v374_v2  ;;  %250 = vmatpush.bf16.msra.mxu1 %v383_v10 }
  0x1b   :  { %153 = vmatpush.bf16.msra.mxu0 %v373_v3  ;;  %251 = vmatpush.bf16.msra.mxu1 %v382_v11 }
  0x1f   :  { %154 = vmatpush.bf16.msra.mxu0 %v372_v4  ;;  %252 = vmatpush.bf16.msra.mxu1 %v381_v12 }
  0x23   :  { %155 = vmatpush.bf16.msra.mxu0 %v371_v5  ;;  %253 = vmatpush.bf16.msra.mxu1 %v380_v13 }
  0x27   :  { %156 = vmatpush.bf16.msra.mxu0 %v370_v6  ;;  %254 = vmatpush.bf16.msra.mxu1 %v379_v14 }
  0x2b   :  { %157 = vmatpush.bf16.msra.mxu0 %v369_v7  ;;  %255 = vmatpush.bf16.msra.mxu1 %v378_v15 }
  0x2e   :  { %158 = vmatmul.bf16.vlgmr.msra.gmra.mxu0 %v368_v8 }
  0x2f   :  { %256 = vmatpush.bf16.msra.mxu1 %v377_v16 }
  0xab   :  { %v159_v18 = vpop.f32.mrf.mxu0 }
  0xac   :  { %v160_v19 = vadd.f32 %v393_v17, %v159_v18 }
  0xae   :  { %v166_v20 = vmul.f32 %v160_v19, %v160_v19  ;;  %v164_v35 = vmul.f32 0.5, %v160_v19 }
  0xb0   :  { %v168_v21 = vmul.f32 %v166_v20, %v160_v19 }
  0xb2   :  { %v170_v22 = vmul.f32 0.044715, %v168_v21 }
  0xb3   :  { %v161_v23 = vpop.f32.mrf.mxu0 }
  0xb4   :  { %v162_v24 = vadd.f32 %v393_v17, %v161_v23  ;;  %v172_v25 = vadd.f32 %v170_v22, %v160_v19 }
  0xb6   :  { %v167_v26 = vmul.f32 %v162_v24, %v162_v24  ;;  %v174_v28 = vmul.f32 0.7978846, %v172_v25  ;;  %v165_v36 = vmul.f32 0.5, %v162_v24 }
  0xb8   :  { %v169_v27 = vmul.f32 %v167_v26, %v162_v24  ;;  %395 = vtanh.f32 %v174_v28 }
  0xba   :  { %v171_v29 = vmul.f32 0.044715, %v169_v27 }
  0xbc   :  { %v173_v30 = vadd.f32 %v171_v29, %v162_v24 }
  0xbe   :  { %v175_v31 = vmul.f32 0.7978846, %v173_v30  ;;  %v396_v32 = vpop.eup %395 }
  0xbf   :  { %v178_v33 = vadd.f32 1.0, %v396_v32 }
  0xc0   :  { %397 = vtanh.f32 %v175_v31 }
  0xc1   :  { %v180_v38 = vmul.f32 %v178_v33, %v164_v35 }
  0xc6   :  { %v398_v34 = vpop.eup %397 }
  0xc7   :  { %v179_v37 = vadd.f32 1.0, %v398_v34 }
  0xc9   :  { %v181_v39 = vmul.f32 %v179_v37, %v165_v36 }
  0xcb   :  { %v184_v40 = vpack.c.bf16 %v181_v39, %v180_v38 }
  0xcd   :  { %257 = vmatmul.bf16.vlgmr.msra.gmra.mxu1 %v184_v40 }
 0x14a   :  { %v258_v42 = vpop.f32.mrf.mxu1 }
 0x14b   :  { %v276_v43 = vadd.f32 %v394_v41, %v258_v42 }
 0x14d   :  { %278 = vst [vmem:[#allocation9] sm:$0xff] %v276_v43 }
 0x152   :  { %v260_v44 = vpop.f32.mrf.mxu1 }
 0x153   :  { %v277_v45 = vadd.f32 %v394_v41, %v260_v44 }
 0x155   :  { %279 = vst [vmem:[#allocation9 + $0x8] sm:$0xff] %v277_v45 }
 0x156   :  { %292 = dma.vmem_to_hbm [thread:$0]  %s285_s11, 256, %s287_s14, [#allocation5], %s507_s15, %s507_s15, %s508_s16  }
 0x157   :  { %499 = dma.done.wait [#allocation5], 256  }
 0x158   :  { %500 = vsyncadd [#allocation5], 4294967040 }
 0x159   :  { %297 = vsyncpa [#allocation4], 1 }
 0x15a   :  { %298 = vsyncpa [#allocation7], 1 }
 0x15b   :  { %299 = vsyncpa [#allocation5], 1 }

</bundles_post_ra>
